<compile_context>
chip_gen: v6e
topology: v6e:2x2x1
jax: 0.10.0
libtpu: 0.0.40
codegen_flags: <defaults>
</compile_context>

<pallas_src>
import functools

import jax
import jax.numpy as jnp
from jax.experimental import pallas as pl
from jax.experimental.pallas import tpu as pltpu

_LANE = 128


def _round_up(x, m):
    return ((x + m - 1) // m) * m


def attention_kernel(enc_ref, att2_ref, we_ref, be_ref, wf_ref, bf_ref,
                     awe_ref, alpha_ref, *, num_pixels):
    """Processes one block of `bt` batch elements per grid step.

    enc_ref   : (bt, Pp, Ep)  compute dtype (bf16/f32), pixel/enc dims padded
    att2_ref  : (bt, Ap)      f32   decoder projection (precomputed outside)
    we_ref    : (Ep, Ap)      compute dtype  encoder_att weight (in, out)
    be_ref    : (1, Ap)       f32   encoder_att bias
    wf_ref    : (1, Ap)       f32   full_att weight as a row vector
    bf_ref    : (1, 1)        f32   full_att bias (cancels in softmax)
    awe_ref   : (bt, Ep)      f32   attention-weighted encoding (lane-dense)
    alpha_ref : (bt, Pp)      f32   attention weights (lane-dense)
    """
    bt, pp, ep = enc_ref.shape
    ap = we_ref.shape[1]

    enc = enc_ref[...]                                       # (bt, Pp, Ep)

    # att1 = encoder_att(encoder_out): one tall (bt*Pp, Ep) @ (Ep, Ap) MXU matmul.
    att1 = jnp.dot(enc.reshape(bt * pp, ep), we_ref[...],
                   preferred_element_type=jnp.float32).reshape(bt, pp, ap)

    # relu(att1 + b_enc + att2) -- f32 on the VPU.
    h = jnp.maximum(att1 + be_ref[...] + att2_ref[...][:, None, :], 0.0)

    # full_att(.) as a lane-dense (bt, Pp) logit row: reduce h * wf over the
    # attention (lane) axis instead of an M=Pp, N=1 matmul.
    logits = jnp.sum(h * wf_ref[...], axis=-1) + bf_ref[...]  # (bt, Pp)

    # Mask padded pixel lanes so the softmax ignores them.
    if num_pixels < pp:
        lane = jax.lax.broadcasted_iota(jnp.int32, (bt, pp), 1)
        logits = jnp.where(lane < num_pixels, logits, -1e30)

    # Softmax over the pixel (lane) axis.
    m = jnp.max(logits, axis=-1, keepdims=True)               # (bt, 1)
    e = jnp.exp(logits - m)                                   # (bt, Pp)
    s = jnp.sum(e, axis=-1, keepdims=True)                    # (bt, 1)
    alpha = e * pl.reciprocal(s, approx=False)                # (bt, Pp) f32

    # Attention-weighted encoding as a batched (1, Pp) @ (Pp, Ep) MXU matmul.
    awe = jnp.einsum("bqp,bpe->bqe",
                     alpha.reshape(bt, 1, pp).astype(enc.dtype), enc,
                     preferred_element_type=jnp.float32)      # (bt, 1, Ep)

    awe_ref[...] = awe.reshape(bt, ep).astype(awe_ref.dtype)
    alpha_ref[...] = alpha.astype(alpha_ref.dtype)


def attention_forward(encoder_out, decoder_hidden, params, *,
                      block_b=8, compute_dtype=jnp.bfloat16):
    """encoder_out: (B, P, E), decoder_hidden: (B, D)."""
    B, P, E = encoder_out.shape
    A = params["we"].shape[1]

    # Decoder projection hoisted out of the kernel: one (B, D) @ (D, A) matmul
    # for the whole batch (avoids an M=1 MXU op per grid step and keeping Wd
    # resident in VMEM).
    att2 = (decoder_hidden.astype(jnp.float32) @ params["wd"].astype(jnp.float32)
            + params["bd"].astype(jnp.float32))               # (B, A)

    # Lane-dense padding: pixels / encoder dim / attention dim up to 128 so
    # softmax, alpha and awe stores are all unmasked full-lane ops.
    pp = _round_up(P, _LANE)
    ep = _round_up(E, _LANE)
    ap = _round_up(A, _LANE)

    # Batch tiling: bt batch elements per grid step (whole batch in one step
    # when B is small). When the block is not the full batch the sublane
    # constraint requires bt % 8 == 0.
    # Note for v7x: pick block_b so the grid has >= 2 parallel steps (2 TCs).
    bt = max(1, min(block_b, B))
    if bt < B:
        bt = _round_up(bt, 8)
    b_pad = _round_up(B, bt)
    grid = b_pad // bt

    def pad_to(x, shape):
        return jnp.pad(x, [(0, t - s) for s, t in zip(x.shape, shape)])

    enc_p = pad_to(encoder_out, (b_pad, pp, ep)).astype(compute_dtype)
    att2_p = pad_to(att2, (b_pad, ap)).astype(jnp.float32)
    we_p = pad_to(params["we"], (ep, ap)).astype(compute_dtype)
    be_p = pad_to(params["be"], (1, ap)).astype(jnp.float32)
    wf_p = pad_to(params["wf"].reshape(1, A), (1, ap)).astype(jnp.float32)
    bf_p = params["bf"].reshape(1, 1).astype(jnp.float32)

    kernel = functools.partial(attention_kernel, num_pixels=P)

    awe_p, alpha_p = pl.pallas_call(
        kernel,
        out_shape=(
            jax.ShapeDtypeStruct((b_pad, ep), jnp.float32),
            jax.ShapeDtypeStruct((b_pad, pp), jnp.float32),
        ),
        grid_spec=pltpu.PrefetchScalarGridSpec(
            num_scalar_prefetch=0,
            grid=(grid,),
            in_specs=[
                pl.BlockSpec((bt, pp, ep), lambda b: (b, 0, 0)),   # encoder feats
                pl.BlockSpec((bt, ap), lambda b: (b, 0)),          # decoder proj
                # Weights/biases use a constant index_map (same block every
                # step).  Note: for production shapes on v7x (64 MiB VMEM),
                # these can be single-buffered (pipeline_mode=pl.Buffered(1))
                # to free headroom for a bigger encoder tile.
                pl.BlockSpec((ep, ap), lambda b: (0, 0)),          # W_enc
                pl.BlockSpec((1, ap), lambda b: (0, 0)),           # b_enc
                pl.BlockSpec((1, ap), lambda b: (0, 0)),           # W_full row
                pl.BlockSpec((1, 1), lambda b: (0, 0)),            # b_full
            ],
            out_specs=[
                pl.BlockSpec((bt, ep), lambda b: (b, 0)),          # awe
                pl.BlockSpec((bt, pp), lambda b: (b, 0)),          # alpha
            ],
        ),
        compiler_params=pltpu.CompilerParams(
            dimension_semantics=("parallel",)),
    )(enc_p, att2_p, we_p, be_p, wf_p, bf_p)

    return awe_p[:B, :E], alpha_p[:B, :P]


def init_params(key, encoder_dim, decoder_dim, attention_dim):
    """Deterministic init mimicking nn.Linear's U(-1/sqrt(fan_in), 1/sqrt(fan_in)).

    Weights stored as (in_features, out_features)."""
    ks = jax.random.split(key, 6)

    def lin(kw, kb, fan_in, fan_out):
        bound = 1.0 / jnp.sqrt(fan_in)
        w = jax.random.uniform(kw, (fan_in, fan_out), jnp.float32, -bound, bound)
        b = jax.random.uniform(kb, (1, fan_out), jnp.float32, -bound, bound)
        return w, b

    we, be = lin(ks[0], ks[1], encoder_dim, attention_dim)
    wd, bd = lin(ks[2], ks[3], decoder_dim, attention_dim)
    wf, bf = lin(ks[4], ks[5], attention_dim, 1)
    return dict(we=we, be=be, wd=wd, bd=bd, wf=wf, bf=bf)


def attention_reference(encoder_out, decoder_hidden, p):
    """Plain-JAX reference mirroring the PyTorch forward."""
    att1 = encoder_out @ p["we"] + p["be"]                       # (B, P, A)
    att2 = decoder_hidden @ p["wd"] + p["bd"]                    # (B, A)
    h = jax.nn.relu(att1 + att2[:, None, :])                     # (B, P, A)
    att = (h @ p["wf"] + p["bf"])[..., 0]                        # (B, P)
    alpha = jax.nn.softmax(att, axis=1)                          # (B, P)
    awe = (encoder_out * alpha[:, :, None]).sum(axis=1)          # (B, E)
    return awe, alpha


if __name__ == "__main__":
    # Small shapes consistent with the module's forward signature.
    B, P = 2, 8                      # batch, num_pixels
    ENC, DEC, ATT = 32, 32, 32       # encoder_dim, decoder_dim, attention_dim

    key = jax.random.PRNGKey(0)
    k_enc, k_dec, k_par = jax.random.split(key, 3)

    encoder_out = jax.random.normal(k_enc, (B, P, ENC), jnp.float32)
    decoder_hidden = jax.random.normal(k_dec, (B, DEC), jnp.float32)
    params = init_params(k_par, ENC, DEC, ATT)

    awe_ref, alpha_ref = attention_reference(encoder_out, decoder_hidden, params)

    # Strict correctness check: f32 operands end-to-end.
    awe32, alpha32 = attention_forward(encoder_out, decoder_hidden, params,
                                       compute_dtype=jnp.float32)
    awe32 = jax.block_until_ready(awe32)
    alpha32 = jax.block_until_ready(alpha32)
    assert awe32.shape == (B, ENC) and alpha32.shape == (B, P)
    assert jnp.allclose(awe32, awe_ref, atol=1e-4, rtol=1e-4)
    assert jnp.allclose(alpha32, alpha_ref, atol=1e-4, rtol=1e-4)
    assert jnp.allclose(alpha32.sum(axis=1), 1.0, atol=1e-4)

    # Default (performance) path: bf16 MXU operands, f32 accumulation/softmax.
    awe_bf, alpha_bf = attention_forward(encoder_out, decoder_hidden, params)
    awe_bf = jax.block_until_ready(awe_bf)
    alpha_bf = jax.block_until_ready(alpha_bf)
    assert awe_bf.shape == (B, ENC) and alpha_bf.shape == (B, P)
    assert jnp.allclose(awe_bf, awe_ref, atol=5e-2, rtol=5e-2)
    assert jnp.allclose(alpha_bf, alpha_ref, atol=5e-2, rtol=5e-2)
    assert jnp.allclose(alpha_bf.sum(axis=1), 1.0, atol=1e-3)

    print("KERNEL_OK")
</pallas_src>

<mosaic_0001>
module attributes {stable_mosaic.version = 11 : i64} {
  func.func @attention_kernel(%arg0: i32, %arg1: memref<2x128x128xf32, #tpu.memory_space<vmem>>, %arg2: memref<2x128xf32, #tpu.memory_space<vmem>>, %arg3: memref<128x128xf32, #tpu.memory_space<vmem>>, %arg4: memref<1x128xf32, #tpu.memory_space<vmem>>, %arg5: memref<1x128xf32, #tpu.memory_space<vmem>>, %arg6: memref<1x1xf32, #tpu.memory_space<vmem>>, %arg7: memref<2x128xf32, #tpu.memory_space<vmem>>, %arg8: memref<2x128xf32, #tpu.memory_space<vmem>>) attributes {dimension_semantics = [#tpu.dimension_semantics<parallel>], iteration_bounds = array<i64: 1>, scalar_prefetch = 0 : i64, scratch_operands = 0 : i64, tpu.core_type = #tpu.core_type<tc>, window_params = [{transform_indices = @transform_0, window_bounds = array<i64: 2, 128, 128>}, {transform_indices = @transform_1, window_bounds = array<i64: 2, 128>}, {pipeline_mode = #tpu.pipeline_mode<synchronous>, transform_indices = @transform_2, window_bounds = array<i64: 128, 128>}, {pipeline_mode = #tpu.pipeline_mode<synchronous>, transform_indices = @transform_3, window_bounds = array<i64: 1, 128>}, {pipeline_mode = #tpu.pipeline_mode<synchronous>, transform_indices = @transform_4, window_bounds = array<i64: 1, 128>}, {pipeline_mode = #tpu.pipeline_mode<synchronous>, transform_indices = @transform_5, window_bounds = array<i64: 1, 1>}, {transform_indices = @transform_6, window_bounds = array<i64: 2, 128>}, {transform_indices = @transform_7, window_bounds = array<i64: 2, 128>}]} {
    %c0 = arith.constant 0 : index
    %c0_0 = arith.constant 0 : index
    %c0_1 = arith.constant 0 : index
    %0 = vector.load %arg1[%c0, %c0_0, %c0_1] : memref<2x128x128xf32, #tpu.memory_space<vmem>>, vector<2x128x128xf32>
    %1 = vector.shape_cast %0 : vector<2x128x128xf32> to vector<256x128xf32>
    %c0_2 = arith.constant 0 : index
    %c0_3 = arith.constant 0 : index
    %2 = vector.load %arg3[%c0_2, %c0_3] : memref<128x128xf32, #tpu.memory_space<vmem>>, vector<128x128xf32>
    %cst = arith.constant dense<0.000000e+00> : vector<256x128xf32>
    %3 = tpu.matmul %1, %2, %cst {dimension_numbers = #tpu.dot_dimension_numbers<[1], [0], [0], [1], [0, 0, 1, 1], [], []>} : vector<256x128xf32>, vector<128x128xf32>, vector<256x128xf32> -> vector<256x128xf32>
    %4 = vector.shape_cast %3 : vector<256x128xf32> to vector<2x128x128xf32>
    %c0_4 = arith.constant 0 : index
    %c0_5 = arith.constant 0 : index
    %5 = vector.load %arg4[%c0_4, %c0_5] : memref<1x128xf32, #tpu.memory_space<vmem>>, vector<1x128xf32>
    %6 = vector.shape_cast %5 : vector<1x128xf32> to vector<1x1x128xf32>
    %7 = vector.broadcast %6 : vector<1x1x128xf32> to vector<2x128x128xf32>
    %8 = arith.addf %4, %7 : vector<2x128x128xf32>
    %c0_6 = arith.constant 0 : index
    %c0_7 = arith.constant 0 : index
    %9 = vector.load %arg2[%c0_6, %c0_7] : memref<2x128xf32, #tpu.memory_space<vmem>>, vector<2x128xf32>
    %10 = vector.shape_cast %9 : vector<2x128xf32> to vector<2x1x128xf32>
    %11 = vector.broadcast %10 : vector<2x1x128xf32> to vector<2x128x128xf32>
    %12 = arith.addf %8, %11 : vector<2x128x128xf32>
    %cst_8 = arith.constant 0.000000e+00 : f32
    %13 = vector.broadcast %cst_8 : f32 to vector<2x128x128xf32>
    %14 = arith.maximumf %12, %13 : vector<2x128x128xf32>
    %c0_9 = arith.constant 0 : index
    %c0_10 = arith.constant 0 : index
    %15 = vector.load %arg5[%c0_9, %c0_10] : memref<1x128xf32, #tpu.memory_space<vmem>>, vector<1x128xf32>
    %16 = vector.shape_cast %15 : vector<1x128xf32> to vector<1x1x128xf32>
    %17 = vector.broadcast %16 : vector<1x1x128xf32> to vector<2x128x128xf32>
    %18 = arith.mulf %14, %17 : vector<2x128x128xf32>
    %cst_11 = arith.constant dense<0.000000e+00> : vector<2x128xf32>
    %19 = vector.multi_reduction <add>, %18, %cst_11 [2] : vector<2x128x128xf32> to vector<2x128xf32>
    %c0_12 = arith.constant 0 : index
    %c0_13 = arith.constant 0 : index
    %20 = vector.load %arg6[%c0_12, %c0_13] : memref<1x1xf32, #tpu.memory_space<vmem>>, vector<1x1xf32>
    %21 = vector.broadcast %20 : vector<1x1xf32> to vector<2x128xf32>
    %22 = arith.addf %19, %21 : vector<2x128xf32>
    %23 = tpu.iota {dimensions = array<i32: 1>} : vector<2x128xi32>
    %c8_i32 = arith.constant 8 : i32
    %24 = vector.broadcast %c8_i32 : i32 to vector<2x128xi32>
    %25 = arith.cmpi slt, %23, %24 : vector<2x128xi32>
    %cst_14 = arith.constant -1.000000e+30 : f32
    %26 = vector.broadcast %cst_14 : f32 to vector<2x128xf32>
    %27 = arith.select %25, %22, %26 : vector<2x128xi1>, vector<2x128xf32>
    %cst_15 = arith.constant dense<0xFF800000> : vector<2xf32>
    %28 = vector.multi_reduction <maximumf>, %27, %cst_15 [1] : vector<2x128xf32> to vector<2xf32>
    %29 = vector.shape_cast %28 : vector<2xf32> to vector<2x1xf32>
    %30 = vector.broadcast %29 : vector<2x1xf32> to vector<2x128xf32>
    %31 = arith.subf %27, %30 : vector<2x128xf32>
    %32 = math.exp %31 : vector<2x128xf32>
    %cst_16 = arith.constant dense<0.000000e+00> : vector<2xf32>
    %33 = vector.multi_reduction <add>, %32, %cst_16 [1] : vector<2x128xf32> to vector<2xf32>
    %34 = vector.shape_cast %33 : vector<2xf32> to vector<2x1xf32>
    %35 = tpu.reciprocal %34 : vector<2x1xf32> -> vector<2x1xf32>
    %36 = vector.broadcast %35 : vector<2x1xf32> to vector<2x128xf32>
    %37 = arith.mulf %32, %36 : vector<2x128xf32>
    %38 = vector.shape_cast %37 : vector<2x128xf32> to vector<2x1x128xf32>
    "tpu.trace_start"() <{level = 10 : i32, message = "bqp,bpe->bqe"}> : () -> ()
    %cst_17 = arith.constant dense<0.000000e+00> : vector<2x1x128xf32>
    %39 = tpu.matmul %38, %0, %cst_17 {dimension_numbers = #tpu.dot_dimension_numbers<[2], [1], [1], [2], [0, 0, 0, 1, 1, 2], [0], [0]>} : vector<2x1x128xf32>, vector<2x128x128xf32>, vector<2x1x128xf32> -> vector<2x1x128xf32>
    "tpu.trace_stop"() : () -> ()
    %40 = vector.shape_cast %39 : vector<2x1x128xf32> to vector<2x128xf32>
    %c0_18 = arith.constant 0 : index
    %c0_19 = arith.constant 0 : index
    %41 = vector.load %arg7[%c0_18, %c0_19] : memref<2x128xf32, #tpu.memory_space<vmem>>, vector<2x128xf32>
    tpu.vector_store %arg7[%c0_18, %c0_19], %40 {strides = array<i32>} : memref<2x128xf32, #tpu.memory_space<vmem>>, vector<2x128xf32>,
    %c0_20 = arith.constant 0 : index
    %c0_21 = arith.constant 0 : index
    %42 = vector.load %arg8[%c0_20, %c0_21] : memref<2x128xf32, #tpu.memory_space<vmem>>, vector<2x128xf32>
    tpu.vector_store %arg8[%c0_20, %c0_21], %37 {strides = array<i32>} : memref<2x128xf32, #tpu.memory_space<vmem>>, vector<2x128xf32>,
    return
  }
  func.func @transform_0(%arg0: i32) -> (i32, i32, i32) {
    %c0_i32 = arith.constant 0 : i32
    %c0_i32_0 = arith.constant 0 : i32
    %c0_i32_1 = arith.constant 0 : i32
    return %arg0, %c0_i32, %c0_i32_0 : i32, i32, i32
  }
  func.func @transform_1(%arg0: i32) -> (i32, i32) {
    %c0_i32 = arith.constant 0 : i32
    %c0_i32_0 = arith.constant 0 : i32
    return %arg0, %c0_i32 : i32, i32
  }
  func.func @transform_2(%arg0: i32) -> (i32, i32) {
    %c0_i32 = arith.constant 0 : i32
    %c0_i32_0 = arith.constant 0 : i32
    %c0_i32_1 = arith.constant 0 : i32
    return %c0_i32, %c0_i32_0 : i32, i32
  }
  func.func @transform_3(%arg0: i32) -> (i32, i32) {
    %c0_i32 = arith.constant 0 : i32
    %c0_i32_0 = arith.constant 0 : i32
    %c0_i32_1 = arith.constant 0 : i32
    return %c0_i32, %c0_i32_0 : i32, i32
  }
  func.func @transform_4(%arg0: i32) -> (i32, i32) {
    %c0_i32 = arith.constant 0 : i32
    %c0_i32_0 = arith.constant 0 : i32
    %c0_i32_1 = arith.constant 0 : i32
    return %c0_i32, %c0_i32_0 : i32, i32
  }
  func.func @transform_5(%arg0: i32) -> (i32, i32) {
    %c0_i32 = arith.constant 0 : i32
    %c0_i32_0 = arith.constant 0 : i32
    %c0_i32_1 = arith.constant 0 : i32
    return %c0_i32, %c0_i32_0 : i32, i32
  }
  func.func @transform_6(%arg0: i32) -> (i32, i32) {
    %c0_i32 = arith.constant 0 : i32
    %c0_i32_0 = arith.constant 0 : i32
    return %arg0, %c0_i32 : i32, i32
  }
  func.func @transform_7(%arg0: i32) -> (i32, i32) {
    %c0_i32 = arith.constant 0 : i32
    %c0_i32_0 = arith.constant 0 : i32
    return %arg0, %c0_i32 : i32, i32
  }
}

</mosaic_0001>

<bundles_post_ra>
// kernel: tpu_custom_call.1
= control target key start
LH: loop header
LB: loop body
LE: loop exit
PB: predicated region body
PF: predicated region fallthrough
CT: control target
= control target key end

     0   :  { %s1933_s0 = inlined_call_operand.hbm [shape: f32[2,128,128], index: 0, kind: input, shape index: {}]   ;;  %s1934_s1 = inlined_call_operand.vmem [shape: f32[2,128], index: 1, kind: input, shape index: {}]   ;;  %s1935_s2 = inlined_call_operand.hbm [shape: f32[128,128], index: 2, kind: input, shape index: {}]   ;;  %s1936_s3 = inlined_call_operand.vmem [shape: f32[1,128], index: 3, kind: input, shape index: {}]   ;;  %s1937_s4 = inlined_call_operand.vmem [shape: f32[1,128], index: 4, kind: input, shape index: {}]   ;;  %s1938_s5 = inlined_call_operand.<no memory space> [shape: f32[1,1], index: 5, kind: input, shape index: {}]   ;;  %s1939_s6 = inlined_call_operand.hbm [shape: f32[2,128], index: 6, kind: output, shape index: {0}]   ;;  %s1940_s7 = inlined_call_operand.hbm [shape: f32[2,128], index: 7, kind: output, shape index: {1}]  }
   0x1   :  { %v13_v0 = vstv %s1938_s5 }
   0x2   :  { %14 = vst [vmem:[#allocation2] sm:$0x1] %v13_v0 }
   0x3   :  { %15 = vsyncpa [#allocation4], 0 }
   0x4   :  { %16 = vsyncpa [#allocation7], 0 }
   0x5   :  { %17 = vsyncpa [#allocation5], 0 }
   0x6   :  { %18 = vsyncpa [#allocation10], 0  ;;  %s1393_s26 = smov [#allocation3]  }
   0x7   :  { %s24_s27 = sshll.u32 %s1393_s26, 4  ;;  %s25_s27 = int_to_ptr.vmem [resolvable:$true] %s24_s27 }
   0x8   :  { %s1313_s28 = scalar_lea.vmem %s25_s27, 4096  ;;  %p1318_p1 = scmp.lt.s32.totalorder %s25_s27, %s25_s27 }
   0x9   :  { %p1314_p0 = scmp.ne.s32.totalorder %s25_s27, %s1313_s28  ;;  %p1319_p2 = scmp.lt.s32.totalorder %s1313_s28, %s1313_s28 }
   0xb   :  { %p1320_p3 = por %p1319_p2, %p1318_p1 }
   0xd   :  { %p1321_p4 = pnand %p1320_p3, %p1314_p0 }
   0xf   :  { %1324 = shalt.err (!%p1321_p4)
}
  0x10   :  { %s1394_s29 = smov 128   ;;  %s1395_s30 = smov 8  }
  0x11   :  { %30 = dma.hbm_to_vmem [thread:$0]  %s1933_s0, 4096, %s25_s27, [#allocation4], %s1394_s29, %s1394_s29, %s1395_s30  }
  0x12   :  { %s1396_s5 = smov [#allocation6]  }
  0x13   :  { %s38_s10 = sshll.u32 %s1396_s5, 4  ;;  %s39_s10 = int_to_ptr.vmem [resolvable:$true] %s38_s10 }
  0x14   :  { %s1333_s11 = scalar_lea.vmem %s39_s10, 2048  ;;  %p1338_p6 = scmp.lt.s32.totalorder %s39_s10, %s39_s10 }
  0x15   :  { %p1334_p5 = scmp.ne.s32.totalorder %s39_s10, %s1333_s11  ;;  %p1339_p7 = scmp.lt.s32.totalorder %s1333_s11, %s1333_s11 }
  0x17   :  { %p1340_p8 = por %p1339_p7, %p1338_p6 }
  0x19   :  { %p1341_p9 = pnand %p1340_p8, %p1334_p5 }
  0x1b   :  { %1344 = shalt.err (!%p1341_p9)
}
  0x1c   :  { %44 = dma.hbm_to_vmem [thread:$0]  %s1935_s2, 2048, %s39_s10, [#allocation7], %s1394_s29, %s1394_s29, %s1395_s30  }
  0x1d   :  { %1385 = dma.done.wait [#allocation4], 4096  }
  0x1e   :  { %1386 = vsyncadd [#allocation4], 4294963200 }
  0x1f   :  { %1387 = dma.done.wait [#allocation7], 2048  }
  0x20   :  { %1388 = vsyncadd [#allocation7], 4294965248  ;;  %v104_v1 = vld [vmem:[#allocation6 + $0x78] sm:$0xff]  ;;  %v103_v2 = vld [vmem:[#allocation6 + $0x70] sm:$0xff]  ;;  %v1397_v49 = vmov 0   ;;  %v382_v52 = vlaneseq  ;;  %vm656_vm0 = vcmask 130112  }
  0x21   :  { %1139 = vmatprep.subr.mxu0 %v104_v1  ;;  %v102_v3 = vld [vmem:[#allocation6 + $0x68] sm:$0xff]  ;;  %v101_v4 = vld [vmem:[#allocation6 + $0x60] sm:$0xff]  ;;  %v100_v6 = vld [vmem:[#allocation6 + $0x58] sm:$0xff]  ;;  %1299 = vset.pattern.permute.xlu0 %v1397_v49  ;;  %v1398_v50 = vmov 1966171168   ;;  %vm663_vm1 = vcmask 195712  }
  0x22   :  { %1140 = vmatpush3.msra.mxu0 %v104_v1  ;;  %v57_v5 = vld [vmem:[#allocation3] sm:$0xff]  ;;  %v99_v7 = vld [vmem:[#allocation6 + $0x50] sm:$0xff]  ;;  %v98_v8 = vld [vmem:[#allocation6 + $0x48] sm:$0xff]  ;;  %v380_v51 = vunpack.c.l.s4 %v1398_v50  ;;  %v1546_v54 = vshrl.u32 %v382_v52, 7  ;;  %vm670_vm2 = vcmask 261312   ;;  %vm677_vm3 = vcmask 326912  }
  0x23   :  { %1141 = vmatprep.subr.mxu0 %v103_v2  ;;  %1171 = vmatprep.mubr.f32.mxu0 %v57_v5  ;;  %v97_v9 = vld [vmem:[#allocation6 + $0x40] sm:$0xff]  ;;  %v96_v10 = vld [vmem:[#allocation6 + $0x38] sm:$0xff]  ;;  %v95_v11 = vld [vmem:[#allocation6 + $0x30] sm:$0xff]  ;;  %vm684_vm4 = vcmask 392512   ;;  %vm691_vm5 = vcmask 458112   ;;  %vm698_vm6 = vcmask 523712  }
  0x24   :  { %1142 = vmatpush3.msra.mxu0 %v103_v2  ;;  %v94_v12 = vld [vmem:[#allocation6 + $0x28] sm:$0xff]  ;;  %v93_v13 = vld [vmem:[#allocation6 + $0x20] sm:$0xff]  ;;  %v92_v14 = vld [vmem:[#allocation6 + $0x18] sm:$0xff]  ;;  %v381_v53 = vunpack.c.0.s8 %v380_v51  ;;  %v395_v58 = vsub.s32 0, %v1546_v54  ;;  %vm705_vm7 = vcmask 589312   ;;  %vm712_vm8 = vcmask 654912  }
  0x25   :  { %1143 = vmatprep.subr.mxu0 %v102_v3  ;;  %v91_v15 = vld [vmem:[#allocation6 + $0x10] sm:$0xff]  ;;  %v90_v16 = vld [vmem:[#allocation6 + $0x8] sm:$0xff]  ;;  %v89_v17 = vld [vmem:[#allocation6] sm:$0xff]  ;;  %vm719_vm9 = vcmask 720512   ;;  %vm726_vm10 = vcmask 786112   ;;  %vm733_vm11 = vcmask 851712  }
  0x26   :  { %1144 = vmatpush3.msra.mxu0 %v102_v3  ;;  %v1452_v18 = vld [vmem:[#allocation3 + $0x8] sm:$0xff]  ;;  %v1454_v19 = vld [vmem:[#allocation3 + $0x10] sm:$0xff]  ;;  %v1458_v20 = vld [vmem:[#allocation3 + $0x18] sm:$0xff]  ;;  %v1549_v55 = vsub.s32 %v381_v53, %v1546_v54  ;;  %vm740_vm12 = vcmask 917312   ;;  %vm747_vm13 = vcmask 982912   ;;  %vm754_vm14 = vcmask 1048512  }
  0x27   :  { %1145 = vmatprep.subr.mxu0 %v101_v4  ;;  %v1460_v21 = vld [vmem:[#allocation3 + $0x20] sm:$0xff]  ;;  %v1464_v22 = vld [vmem:[#allocation3 + $0x28] sm:$0xff]  ;;  %v1466_v23 = vld [vmem:[#allocation3 + $0x30] sm:$0xff]  ;;  %vm835_vm15 = vcmask 1041409  }
  0x28   :  { %1146 = vmatpush3.msra.mxu0 %v101_v4  ;;  %v1470_v24 = vld [vmem:[#allocation3 + $0x38] sm:$0xff]  ;;  %v1472_v25 = vld [vmem:[#allocation3 + $0x40] sm:$0xff]  ;;  %v1476_v26 = vld [vmem:[#allocation3 + $0x48] sm:$0xff] }
  0x29   :  { %1147 = vmatprep.subr.mxu0 %v100_v6  ;;  %v1478_v27 = vld [vmem:[#allocation3 + $0x50] sm:$0xff]  ;;  %v1482_v28 = vld [vmem:[#allocation3 + $0x58] sm:$0xff]  ;;  %v1484_v29 = vld [vmem:[#allocation3 + $0x60] sm:$0xff] }
  0x2a   :  { %1148 = vmatpush3.msra.mxu0 %v100_v6  ;;  %v1488_v30 = vld [vmem:[#allocation3 + $0x68] sm:$0xff]  ;;  %v1490_v31 = vld [vmem:[#allocation3 + $0x70] sm:$0xff]  ;;  %v1494_v32 = vld [vmem:[#allocation3 + $0x78] sm:$0xff] }
  0x2b   :  { %1149 = vmatprep.subr.mxu0 %v99_v7  ;;  %v1496_v33 = vld [vmem:[#allocation3 + $0x80] sm:$0xff]  ;;  %v1500_v34 = vld [vmem:[#allocation3 + $0x88] sm:$0xff]  ;;  %v1502_v35 = vld [vmem:[#allocation3 + $0x90] sm:$0xff] }
  0x2c   :  { %1150 = vmatpush3.msra.mxu0 %v99_v7  ;;  %1952 = vst [vmem:[#allocation15_spill] sm:$0xff] %v1496_v33  ;;  %1953 = vst [vmem:[#allocation16_spill] sm:$0xff] %v1500_v34  ;;  %v1506_v36 = vld [vmem:[#allocation3 + $0x98] sm:$0xff]  ;;  %v1508_v37 = vld [vmem:[#allocation3 + $0xa0] sm:$0xff] }
  0x2d   :  { %1151 = vmatprep.subr.mxu0 %v98_v8  ;;  %1954 = vst [vmem:[#allocation17_spill] sm:$0xff] %v1502_v35  ;;  %1955 = vst [vmem:[#allocation18_spill] sm:$0xff] %v1506_v36  ;;  %v1512_v38 = vld [vmem:[#allocation3 + $0xa8] sm:$0xff]  ;;  %v1514_v39 = vld [vmem:[#allocation3 + $0xb0] sm:$0xff] }
  0x2e   :  { %1152 = vmatpush3.msra.mxu0 %v98_v8  ;;  %1956 = vst [vmem:[#allocation19_spill] sm:$0xff] %v1508_v37  ;;  %1957 = vst [vmem:[#allocation20_spill] sm:$0xff] %v1512_v38  ;;  %v1518_v40 = vld [vmem:[#allocation3 + $0xb8] sm:$0xff]  ;;  %v1520_v41 = vld [vmem:[#allocation3 + $0xc0] sm:$0xff] }
  0x2f   :  { %1153 = vmatprep.subr.mxu0 %v97_v9  ;;  %1958 = vst [vmem:[#allocation21_spill] sm:$0xff] %v1514_v39  ;;  %1959 = vst [vmem:[#allocation22_spill] sm:$0xff] %v1518_v40  ;;  %v1524_v42 = vld [vmem:[#allocation3 + $0xc8] sm:$0xff]  ;;  %v1526_v43 = vld [vmem:[#allocation3 + $0xd0] sm:$0xff] }
  0x30   :  { %1154 = vmatpush3.msra.mxu0 %v97_v9  ;;  %1960 = vst [vmem:[#allocation23_spill] sm:$0xff] %v1520_v41  ;;  %1961 = vst [vmem:[#allocation24_spill] sm:$0xff] %v1524_v42  ;;  %v1530_v44 = vld [vmem:[#allocation3 + $0xd8] sm:$0xff]  ;;  %v1532_v45 = vld [vmem:[#allocation3 + $0xe0] sm:$0xff] }
  0x31   :  { %1155 = vmatprep.subr.mxu0 %v96_v10  ;;  %1962 = vst [vmem:[#allocation25_spill] sm:$0xff] %v1526_v43  ;;  %v1536_v46 = vld [vmem:[#allocation3 + $0xe8] sm:$0xff]  ;;  %v1538_v47 = vld [vmem:[#allocation3 + $0xf0] sm:$0xff]  ;;  %v1542_v48 = vld [vmem:[#allocation3 + $0xf8] sm:$0xff] }
  0x32   :  { %1156 = vmatpush3.msra.mxu0 %v96_v10  ;;  %v1554_v56 = vld.sshfl [vmem:[%s1934_s1] sm:$0x11 pattern:$0x75316420] }
  0x33   :  { %1157 = vmatprep.subr.mxu0 %v95_v11  ;;  %v385_v57 = vrot.slane %v1554_v56, %v1549_v55  ;;  %v1562_v59 = vld [vmem:[%s1936_s3] ss:$0 sm:$0xff]  ;;  %s1401_s3 = smov [#allocation9]  }
  0x34   :  { %1158 = vmatpush3.msra.mxu0 %v95_v11  ;;  %v1574_v3 = vld [vmem:[%s1937_s4] ss:$0 sm:$0xff]  ;;  %s1039_s4 = sshll.u32 %s1401_s3, 4  ;;  %s1040_s4 = int_to_ptr.vmem [resolvable:$true] %s1039_s4 }
  0x35   :  { %1159 = vmatprep.subr.mxu0 %v94_v12  ;;  %v1566_v60 = vrot.slane %v385_v57, %v395_v58  ;;  %s1345_s17 = scalar_lea.vmem %s1040_s4, 32  ;;  %p1350_p11 = scmp.lt.s32.totalorder %s1040_s4, %s1040_s4 }
  0x36   :  { %1160 = vmatpush3.msra.mxu0 %v94_v12  ;;  %p1346_p10 = scmp.ne.s32.totalorder %s1040_s4, %s1345_s17  ;;  %p1351_p12 = scmp.lt.s32.totalorder %s1345_s17, %s1345_s17 }
  0x37   :  { %1161 = vmatprep.subr.mxu0 %v93_v13 }
  0x38   :  { %1162 = vmatpush3.msra.mxu0 %v93_v13  ;;  %p1352_p13 = por %p1351_p12, %p1350_p11 }
  0x39   :  { %1163 = vmatprep.subr.mxu0 %v92_v14 }
  0x3a   :  { %1164 = vmatpush3.msra.mxu0 %v92_v14  ;;  %p1353_p0 = pnand %p1352_p13, %p1346_p10 }
  0x3b   :  { %1165 = vmatprep.subr.mxu0 %v91_v15 }
  0x3c   :  { %1166 = vmatpush3.msra.mxu0 %v91_v15 }
  0x3d   :  { %1167 = vmatprep.subr.mxu0 %v90_v16 }
  0x3e   :  { %1168 = vmatpush3.msra.mxu0 %v90_v16 }
  0x3f   :  { %1169 = vmatprep.subr.mxu0 %v89_v17 }
  0x40   :  { %1170 = vmatpush3.msra.mxu0 %v89_v17 }
  0x41   :  { %1172 = vmatmul.mubr.f32.vlgmr.msra.gmra.mxu0 %v1452_v18 }
  0x42   :  { %1174 = vmatprep.mubr.f32.mxu0 %v1454_v19 }
  0x45   :  { %1175 = vmatmul.mubr.f32.gmra.mxu0 %v1458_v20 }
  0x46   :  { %1177 = vmatprep.mubr.f32.mxu0 %v1460_v21 }
  0x49   :  { %1178 = vmatmul.mubr.f32.gmra.mxu0 %v1464_v22 }
  0x4a   :  { %1180 = vmatprep.mubr.f32.mxu0 %v1466_v23 }
  0x4d   :  { %1181 = vmatmul.mubr.f32.gmra.mxu0 %v1470_v24 }
  0x4e   :  { %1183 = vmatprep.mubr.f32.mxu0 %v1472_v25 }
  0x51   :  { %1184 = vmatmul.mubr.f32.gmra.mxu0 %v1476_v26 }
  0x52   :  { %1186 = vmatprep.mubr.f32.mxu0 %v1478_v27 }
  0x55   :  { %1187 = vmatmul.mubr.f32.gmra.mxu0 %v1482_v28 }
  0x56   :  { %1189 = vmatprep.mubr.f32.mxu0 %v1484_v29 }
  0x59   :  { %1190 = vmatmul.mubr.f32.gmra.mxu0 %v1488_v30 }
  0x5a   :  { %1192 = vmatprep.mubr.f32.mxu0 %v1490_v31 }
  0x5d   :  { %1193 = vmatmul.mubr.f32.gmra.mxu0 %v1494_v32 }
  0x5e   :  { %1195 = vmatprep.mubr.f32.mxu0 %v1496_v33 }
  0x61   :  { %1196 = vmatmul.mubr.f32.gmra.mxu0 %v1500_v34 }
  0x62   :  { %1198 = vmatprep.mubr.f32.mxu0 %v1502_v35 }
  0x65   :  { %1199 = vmatmul.mubr.f32.gmra.mxu0 %v1506_v36 }
  0x66   :  { %1201 = vmatprep.mubr.f32.mxu0 %v1508_v37 }
  0x69   :  { %1202 = vmatmul.mubr.f32.gmra.mxu0 %v1512_v38 }
  0x6a   :  { %1204 = vmatprep.mubr.f32.mxu0 %v1514_v39 }
  0x6d   :  { %1205 = vmatmul.mubr.f32.gmra.mxu0 %v1518_v40 }
  0x6e   :  { %1207 = vmatprep.mubr.f32.mxu0 %v1520_v41 }
  0x71   :  { %1208 = vmatmul.mubr.f32.gmra.mxu0 %v1524_v42 }
  0x72   :  { %1210 = vmatprep.mubr.f32.mxu0 %v1526_v43 }
  0x75   :  { %1211 = vmatmul.mubr.f32.gmra.mxu0 %v1530_v44 }
  0x76   :  { %1213 = vmatprep.mubr.f32.mxu0 %v1532_v45 }
  0x79   :  { %1214 = vmatmul.mubr.f32.gmra.mxu0 %v1536_v46 }
  0x7a   :  { %1216 = vmatprep.mubr.f32.mxu0 %v1538_v47 }
  0x7d   :  { %1217 = vmatmul.mubr.f32.gmra.mxu0 %v1542_v48 }
 0x101   :  { %v1173_v61 = vpop.f32.mrf.mxu0 }
 0x102   :  { %v338_v62 = vadd.f32 %v1173_v61, %v1562_v59 }
 0x103   :  { %v171_v63 = vpop.f32.mrf.mxu0 }
 0x104   :  { %v337_v0 = vadd.f32 %v1562_v59, %v171_v63  ;;  %v404_v1 = vadd.f32 %v1566_v60, %v338_v62 }
 0x105   :  { %v1176_v2 = vpop.f32.mrf.mxu0 }
 0x106   :  { %v403_v4 = vadd.f32 %v1566_v60, %v337_v0  ;;  %v340_v5 = vadd.f32 %v1176_v2, %v1562_v59  ;;  %v436_v6 = vmax.f32 %v404_v1, 0.0 }
 0x107   :  { %v181_v7 = vpop.f32.mrf.mxu0 }
 0x108   :  { %v435_v8 = vmax.f32 %v403_v4, 0.0  ;;  %v406_v9 = vadd.f32 %v1566_v60, %v340_v5  ;;  %v339_v10 = vadd.f32 %v1562_v59, %v181_v7  ;;  %v475_v11 = vmul.f32 %v1574_v3, %v436_v6 }
 0x109   :  { %v1179_v12 = vpop.f32.mrf.mxu0 }
 0x10a   :  { %508 = vadd.xlane.f32.xlu0 %v475_v11  ;;  %v438_v14 = vmax.f32 %v406_v9, 0.0  ;;  %v405_v15 = vadd.f32 %v1566_v60, %v339_v10  ;;  %v342_v16 = vadd.f32 %v1179_v12, %v1562_v59  ;;  %v474_v17 = vmul.f32 %v1574_v3, %v435_v8 }
 0x10b   :  { %v191_v13 = vpop.f32.mrf.mxu0 }
 0x10c   :  { %v341_v50 = vadd.f32 %v1562_v59, %v191_v13  ;;  %v437_v53 = vmax.f32 %v405_v15, 0.0  ;;  %v408_v57 = vadd.f32 %v1566_v60, %v342_v16  ;;  %v477_v61 = vmul.f32 %v1574_v3, %v438_v14 }
 0x10d   :  { %v1182_v49 = vpop.f32.mrf.mxu0 }
 0x10e   :  { %506 = vadd.xlane.f32.xlu0 %v474_v17  ;;  %v407_v0 = vadd.f32 %v1566_v60, %v341_v50  ;;  %v344_v1 = vadd.f32 %v1182_v49, %v1562_v59  ;;  %v440_v4 = vmax.f32 %v408_v57, 0.0  ;;  %v476_v5 = vmul.f32 %v1574_v3, %v437_v53 }
 0x10f   :  { %v201_v51 = vpop.f32.mrf.mxu0 }
 0x110   :  { %v439_v10 = vmax.f32 %v407_v0, 0.0  ;;  %v410_v11 = vadd.f32 %v1566_v60, %v344_v1  ;;  %v343_v12 = vadd.f32 %v1562_v59, %v201_v51  ;;  %v479_v16 = vmul.f32 %v1574_v3, %v440_v4 }
 0x111   :  { %v1185_v62 = vpop.f32.mrf.mxu0  ;;  %v378_v51 = vcombine.high %v1554_v56, %v1554_v56 }
 0x112   :  { %v346_v63 = vadd.f32 %v1185_v62, %v1562_v59  ;;  %512 = vadd.xlane.f32.xlu0 %v477_v61  ;;  %v442_v61 = vmax.f32 %v410_v11, 0.0  ;;  %v409_v62 = vadd.f32 %v1566_v60, %v343_v12  ;;  %v478_v1 = vmul.f32 %v1574_v3, %v439_v10 }
 0x113   :  { %v211_v2 = vpop.f32.mrf.mxu0  ;;  %v392_v11 = vrot.slane %v378_v51, %v1549_v55 }
 0x114   :  { %v412_v6 = vadd.f32 %v1566_v60, %v346_v63  ;;  %v345_v63 = vadd.f32 %v1562_v59, %v211_v2  ;;  %v441_v12 = vmax.f32 %v409_v62, 0.0  ;;  %v481_v10 = vmul.f32 %v1574_v3, %v442_v61 }
 0x115   :  { %v1188_v7 = vpop.f32.mrf.mxu0  ;;  %v1621_v51 = vrot.slane %v392_v11, %v395_v58 }
 0x116   :  { %v348_v8 = vadd.f32 %v1188_v7, %v1562_v59  ;;  %510 = vadd.xlane.f32.xlu0 %v476_v5  ;;  %v444_v9 = vmax.f32 %v412_v6, 0.0  ;;  %v411_v2 = vadd.f32 %v1566_v60, %v345_v63  ;;  %v480_v61 = vmul.f32 %v1574_v3, %v441_v12 }
 0x117   :  { %v221_v13 = vpop.f32.mrf.mxu0 }
 0x118   :  { %v414_v14 = vadd.f32 %v1566_v60, %v348_v8  ;;  %v347_v15 = vadd.f32 %v1562_v59, %v221_v13  ;;  %v483_v17 = vmul.f32 %v1574_v3, %v444_v9  ;;  %v443_v63 = vmax.f32 %v411_v2, 0.0 }
 0x119   :  { %v1191_v49 = vpop.f32.mrf.mxu0 }
 0x11a   :  { %v446_v50 = vmax.f32 %v414_v14, 0.0  ;;  %v413_v53 = vadd.f32 %v1566_v60, %v347_v15  ;;  %516 = vadd.xlane.f32.xlu0 %v479_v16  ;;  %524 = vadd.xlane.f32.xlu1 %v483_v17  ;;  %v350_v57 = vadd.f32 %v1191_v49, %v1562_v59 }
 0x11b   :  { %v231_v0 = vpop.f32.mrf.mxu0 }
 0x11c   :  { %v445_v4 = vmax.f32 %v413_v53, 0.0  ;;  %v416_v5 = vadd.f32 %v1566_v60, %v350_v57  ;;  %v349_v6 = vadd.f32 %v1562_v59, %v231_v0  ;;  %v485_v7 = vmul.f32 %v1574_v3, %v446_v50 }
 0x11d   :  { %v1194_v8 = vpop.f32.mrf.mxu0 }
 0x11e   :  { %v448_v9 = vmax.f32 %v416_v5, 0.0  ;;  %514 = vadd.xlane.f32.xlu0 %v478_v1  ;;  %528 = vadd.xlane.f32.xlu1 %v485_v7  ;;  %v352_v56 = vadd.f32 %v1194_v8, %v1562_v59  ;;  %v415_v14 = vadd.f32 %v1566_v60, %v349_v6  ;;  %v484_v16 = vmul.f32 %v1574_v3, %v445_v4 }
 0x11f   :  { %v241_v13 = vpop.f32.mrf.mxu0 }
 0x120   :  { %v418_v15 = vadd.f32 %v1566_v60, %v352_v56  ;;  %v351_v17 = vadd.f32 %v1562_v59, %v241_v13  ;;  %v487_v53 = vmul.f32 %v1574_v3, %v448_v9  ;;  %v447_v0 = vmax.f32 %v415_v14, 0.0 }
 0x121   :  { %v1197_v49 = vpop.f32.mrf.mxu0  ;;  %v482_v9 = vmul.f32 %v1574_v3, %v443_v63 }
 0x122   :  { %v450_v50 = vmax.f32 %v418_v15, 0.0  ;;  %520 = vadd.xlane.f32.xlu0 %v481_v10  ;;  %526 = vadd.xlane.f32.xlu1 %v484_v16  ;;  %v354_v57 = vadd.f32 %v1197_v49, %v1562_v59  ;;  %v417_v1 = vadd.f32 %v1566_v60, %v351_v17  ;;  %v486_v56 = vmul.f32 %v1574_v3, %v447_v0 }
 0x123   :  { %v251_v62 = vpop.f32.mrf.mxu0 }
 0x124   :  { %v1626_v4 = vmul.f32 %v1574_v3, %v450_v50  ;;  %v420_v6 = vadd.f32 %v1621_v51, %v354_v57  ;;  %v353_v7 = vadd.f32 %v1562_v59, %v251_v62  ;;  %v449_v58 = vmax.f32 %v417_v1, 0.0 }
 0x125   :  { %v1200_v5 = vpop.f32.mrf.mxu0 }
 0x126   :  { %518 = vadd.xlane.f32.xlu0 %v480_v61  ;;  %532 = vadd.xlane.f32.xlu1 %v487_v53  ;;  %v356_v11 = vadd.f32 %v1200_v5, %v1562_v59  ;;  %v452_v60 = vmax.f32 %v420_v6, 0.0  ;;  %v419_v2 = vadd.f32 %v1621_v51, %v353_v7  ;;  %v488_v13 = vmul.f32 %v1574_v3, %v449_v58 }
 0x127   :  { %v261_v8 = vpop.f32.mrf.mxu0 }
 0x128   :  { %v422_v14 = vadd.f32 %v1621_v51, %v356_v11  ;;  %v491_v16 = vmul.f32 %v1574_v3, %v452_v60  ;;  %v451_v49 = vmax.f32 %v419_v2, 0.0  ;;  %v355_v50 = vadd.f32 %v1562_v59, %v261_v8 }
 0x129   :  { %v1203_v12 = vpop.f32.mrf.mxu0 }
 0x12a   :  { %522 = vadd.xlane.f32.xlu0 %v482_v9  ;;  %530 = vadd.xlane.f32.xlu1 %v486_v56  ;;  %v454_v62 = vmax.f32 %v422_v14, 0.0  ;;  %v358_v63 = vadd.f32 %v1203_v12, %v1562_v59  ;;  %v421_v7 = vadd.f32 %v1621_v51, %v355_v50  ;;  %v490_v58 = vmul.f32 %v1574_v3, %v451_v49 }
 0x12b   :  { %v271_v10 = vpop.f32.mrf.mxu0 }
 0x12c   :  { %v424_v12 = vadd.f32 %v1621_v51, %v358_v63  ;;  %v493_v2 = vmul.f32 %v1574_v3, %v454_v62  ;;  %v453_v49 = vmax.f32 %v421_v7, 0.0  ;;  %v357_v50 = vadd.f32 %v1562_v59, %v271_v10 }
 0x12d   :  { %v1206_v15 = vpop.f32.mrf.mxu0 }
 0x12e   :  { %534 = vadd.xlane.f32.xlu1 %v488_v13  ;;  %v360_v17 = vadd.f32 %v1206_v15, %v1562_v59  ;;  %v423_v10 = vadd.f32 %v1621_v51, %v357_v50 }
 0x12f   :  { %v281_v53 = vpop.f32.mrf.mxu0 }
 0x130   :  { %v426_v57 = vadd.f32 %v1621_v51, %v360_v17  ;;  %v359_v61 = vadd.f32 %v1562_v59, %v281_v53 }
 0x131   :  { %v1209_v0 = vpop.f32.mrf.mxu0 }
 0x132   :  { %540 = vadd.xlane.f32.xlu1 %v491_v16  ;;  %v458_v1 = vmax.f32 %v426_v57, 0.0  ;;  %v425_v5 = vadd.f32 %v1621_v51, %v359_v61  ;;  %v362_v6 = vadd.f32 %v1209_v0, %v1562_v59  ;;  %v456_v0 = vmax.f32 %v424_v12, 0.0 }
 0x133   :  { %v291_v8 = vpop.f32.mrf.mxu0 }
 0x134   :  { %v457_v9 = vmax.f32 %v425_v5, 0.0  ;;  %v428_v56 = vadd.f32 %v1621_v51, %v362_v6  ;;  %v361_v11 = vadd.f32 %v1562_v59, %v291_v8  ;;  %v497_v60 = vmul.f32 %v1574_v3, %v458_v1 }
 0x135   :  { %v1212_v13 = vpop.f32.mrf.mxu0  ;;  %v492_v8 = vmul.f32 %v1574_v3, %v453_v49 }
 0x136   :  { %538 = vadd.xlane.f32.xlu1 %v490_v58  ;;  %v460_v14 = vmax.f32 %v428_v56, 0.0  ;;  %v427_v15 = vadd.f32 %v1621_v51, %v361_v11  ;;  %v364_v16 = vadd.f32 %v1212_v13, %v1562_v59  ;;  %v496_v17 = vmul.f32 %v1574_v3, %v457_v9 }
 0x137   :  { %v301_v53 = vpop.f32.mrf.mxu0 }
 0x138   :  { %v459_v57 = vmax.f32 %v427_v15, 0.0  ;;  %v430_v61 = vadd.f32 %v1621_v51, %v364_v16  ;;  %v363_v63 = vadd.f32 %v1562_v59, %v301_v53  ;;  %v499_v62 = vmul.f32 %v1574_v3, %v460_v14 }
 0x139   :  { %v1215_v1 = vpop.f32.mrf.mxu0  ;;  %v495_v14 = vmul.f32 %v1574_v3, %v456_v0 }
 0x13a   :  { %544 = vadd.xlane.f32.xlu1 %v493_v2  ;;  %v462_v5 = vmax.f32 %v430_v61, 0.0  ;;  %v429_v6 = vadd.f32 %v1621_v51, %v363_v63  ;;  %v366_v58 = vadd.f32 %v1215_v1, %v1562_v59  ;;  %v498_v7 = vmul.f32 %v1574_v3, %v459_v57  ;;  %v1056_v2 = vld [vmem:[#allocation2] ss:$0 sm:$0xff] }
 0x13b   :  { %v311_v9 = vpop.f32.mrf.mxu0  ;;  %v455_v57 = vmax.f32 %v423_v10, 0.0 }
 0x13c   :  { %v461_v56 = vmax.f32 %v429_v6, 0.0  ;;  %v432_v11 = vadd.f32 %v1621_v51, %v366_v58  ;;  %v365_v13 = vadd.f32 %v1562_v59, %v311_v9  ;;  %v501_v12 = vmul.f32 %v1574_v3, %v462_v5 }
 0x13d   :  { %v1218_v15 = vpop.f32.mrf.mxu0  ;;  %v494_v9 = vmul.f32 %v1574_v3, %v455_v57 }
 0x13e   :  { %542 = vadd.xlane.f32.xlu1 %v492_v8  ;;  %v464_v16 = vmax.f32 %v432_v11, 0.0  ;;  %v431_v53 = vadd.f32 %v1621_v51, %v365_v13  ;;  %v368_v50 = vadd.f32 %v1218_v15, %v1562_v59  ;;  %v500_v49 = vmul.f32 %v1574_v3, %v461_v56 }
 0x13f   :  { %v321_v61 = vpop.f32.mrf.mxu0 }
 0x140   :  { %577 = vperm.xlu0 %1299, %v1056_v2   ;;  %v463_v63 = vmax.f32 %v431_v53, 0.0  ;;  %v434_v1 = vadd.f32 %v1621_v51, %v368_v50  ;;  %v367_v5 = vadd.f32 %v1562_v59, %v321_v61  ;;  %v503_v6 = vmul.f32 %v1574_v3, %v464_v16 }
 0x142   :  { %548 = vadd.xlane.f32.xlu1 %v495_v14  ;;  %v466_v0 = vmax.f32 %v434_v1, 0.0  ;;  %v433_v58 = vadd.f32 %v1621_v51, %v367_v5  ;;  %v502_v8 = vmul.f32 %v1574_v3, %v463_v63 }
 0x144   :  { %v465_v11 = vmax.f32 %v433_v58, 0.0  ;;  %v505_v10 = vmul.f32 %v1574_v3, %v466_v0 }
 0x146   :  { %546 = vadd.xlane.f32.xlu1 %v494_v9  ;;  %v504_v56 = vmul.f32 %v1574_v3, %v465_v11 }
 0x14a   :  { %552 = vadd.xlane.f32.xlu1 %v497_v60 }
 0x14e   :  { %550 = vadd.xlane.f32.xlu1 %v496_v17 }
 0x152   :  { %556 = vadd.xlane.f32.xlu1 %v499_v62 }
 0x156   :  { %554 = vadd.xlane.f32.xlu1 %v498_v7 }
 0x15a   :  { %560 = vadd.xlane.f32.xlu1 %v501_v12  ;;  %v1688_v12 = vand.u32 127, %v382_v52 }
 0x15c   :  { %v651_v53 = vadd.s32 4294967288, %v1688_v12  ;;  %v665_v50 = vadd.s32 4294967272, %v1688_v12  ;;  %v679_v57 = vadd.s32 4294967256, %v1688_v12  ;;  %v672_v61 = vadd.s32 4294967264, %v1688_v12 }
 0x15d   :  { %v693_v63 = vadd.s32 4294967240, %v1688_v12  ;;  %v1706_v0 = vsub.s32 %v1688_v12, %v1546_v54  ;;  %v707_v9 = vadd.s32 4294967224, %v1688_v12  ;;  %v714_v34 = vadd.s32 4294967216, %v1688_v12 }
 0x15e   :  { %558 = vadd.xlane.f32.xlu1 %v500_v49  ;;  %v658_v49 = vadd.s32 4294967280, %v1688_v12  ;;  %v1701_v52 = vsub.s32 %v651_v53, %v1546_v54  ;;  %v1709_v58 = vsub.s32 %v665_v50, %v1546_v54  ;;  %v1716_v11 = vsub.s32 %v679_v57, %v1546_v54 }
 0x15f   :  { %566 = vadd.xlane.f32.xlu0 %v504_v56  ;;  %v721_v56 = vadd.s32 4294967208, %v1688_v12  ;;  %v1721_v53 = vsub.s32 %v672_v61, %v1546_v54  ;;  %v1724_v50 = vsub.s32 %v693_v63, %v1546_v54  ;;  %v735_v35 = vadd.s32 4294967192, %v1688_v12 }
 0x160   :  { %v1739_v63 = vsub.s32 %v707_v9, %v1546_v54 }
 0x161   :  { %v1747_v40 = vsub.s32 %v721_v56, %v1546_v54 }
 0x162   :  { %564 = vadd.xlane.f32.xlu1 %v503_v6  ;;  %v686_v6 = vadd.s32 4294967248, %v1688_v12 }
 0x164   :  { %v1731_v57 = vsub.s32 %v686_v6, %v1546_v54 }
 0x166   :  { %562 = vadd.xlane.f32.xlu1 %v502_v8  ;;  %v1712_v8 = vsub.s32 %v658_v49, %v1546_v54 }
 0x16a   :  { %536 = vadd.xlane.f32.xlu1 %v1626_v4 }
 0x16e   :  { %568 = vadd.xlane.f32.xlu1 %v505_v10  ;;  %v700_v10 = vadd.s32 4294967232, %v1688_v12 }
 0x170   :  { %v1744_v6 = vsub.s32 %v700_v10, %v1546_v54 }
 0x193   :  { %v509_v59 = vpop.xlane.xlu0 %508 }
 0x197   :  { %v507_v51 = vpop.xlane.xlu0 %506 }
 0x19b   :  { %v513_v13 = vpop.xlane.xlu0 %512 }
 0x19f   :  { %v511_v2 = vpop.xlane.xlu0 %510 }
 0x1a3   :  { %v517_v14 = vpop.xlane.xlu0 %516  ;;  %v1679_v15 = vpop.xlane.xlu1 %524 }
 0x1a7   :  { %v515_v3 = vpop.xlane.xlu0 %514  ;;  %v1681_v60 = vpop.xlane.xlu1 %528 }
 0x1ab   :  { %v521_v17 = vpop.xlane.xlu0 %520  ;;  %v1683_v62 = vpop.xlane.xlu1 %526 }
 0x1af   :  { %v1685_v7 = vpop.xlane.xlu1 %532  ;;  %v519_v4 = vpop.xlane.xlu0 %518 }
 0x1b3   :  { %v1690_v16 = vpop.xlane.xlu1 %530  ;;  %v523_v1 = vpop.xlane.xlu0 %522 }
 0x1b7   :  { %v1698_v5 = vpop.xlane.xlu1 %534 }
 0x1bb   :  { %v1726_v49 = vpop.permute.xlu0 %577  ;;  %v1728_v33 = vpop.xlane.xlu1 %540 }
 0x1bc   :  { %v581_v36 = vadd.f32 %v1726_v49, %v509_v59  ;;  %v580_v61 = vadd.f32 %v1726_v49, %v507_v51  ;;  %v583_v37 = vadd.f32 %v1726_v49, %v513_v13  ;;  %v582_v38 = vadd.f32 %v1726_v49, %v511_v2 }
 0x1bd   :  { %v584_v39 = vadd.f32 %v1726_v49, %v515_v3  ;;  %v585_v51 = vadd.f32 %v1726_v49, %v517_v14  ;;  %v728_v13 = vadd.s32 4294967200, %v1688_v12  ;;  %v1755_v2 = vsub.s32 %v714_v34, %v1546_v54 }
 0x1be   :  { %v655_v41 = vrot.slane %v581_v36, %v1701_v52  ;;  %v650_v59 = vrot.slane %v580_v61, %v1706_v0  ;;  %v662_v42 = vrot.slane %v582_v38, %v1712_v8  ;;  %v1758_v3 = vsub.s32 %v735_v35, %v1546_v54 }
 0x1bf   :  { %v539_v9 = vpop.xlane.xlu1 %538  ;;  %v669_v36 = vrot.slane %v583_v37, %v1709_v58  ;;  %v587_v56 = vadd.f32 %v1726_v49, %v521_v17  ;;  %v586_v14 = vadd.f32 %v1726_v49, %v519_v4  ;;  %v676_v43 = vrot.slane %v584_v39, %v1721_v53 }
 0x1c0   :  { %v657_v10 = vsel %vm656_vm0, %v655_v41, %v650_v59  ;;  %v588_v38 = vadd.f32 %v1726_v49, %v523_v1  ;;  %v683_v34 = vrot.slane %v585_v51, %v1716_v11  ;;  %v589_v41 = vadd.f32 %v1726_v49, %v1679_v15 }
 0x1c1   :  { %v664_v61 = vsel %vm663_vm1, %v662_v42, %v657_v10  ;;  %v1772_v37 = vsub.s32 %v728_v13, %v1546_v54  ;;  %v690_v42 = vrot.slane %v586_v14, %v1731_v57  ;;  %v590_v39 = vadd.f32 %v1726_v49, %v1683_v62 }
 0x1c2   :  { %v671_v35 = vsel %vm670_vm2, %v669_v36, %v664_v61  ;;  %v697_v1 = vrot.slane %v587_v56, %v1724_v50  ;;  %v591_v15 = vadd.f32 %v1726_v49, %v1681_v60  ;;  %v704_v13 = vrot.slane %v588_v38, %v1744_v6 }
 0x1c3   :  { %v545_v17 = vpop.xlane.xlu1 %544  ;;  %v678_v4 = vsel %vm677_vm3, %v676_v43, %v671_v35  ;;  %v592_v43 = vadd.f32 %v1726_v49, %v1690_v16  ;;  %v711_v10 = vrot.slane %v589_v41, %v1739_v63  ;;  %v593_v36 = vadd.f32 %v1726_v49, %v1685_v7 }
 0x1c4   :  { %v685_v59 = vsel %vm684_vm4, %v683_v34, %v678_v4  ;;  %v718_v60 = vrot.slane %v590_v39, %v1755_v2  ;;  %v725_v61 = vrot.slane %v591_v15, %v1747_v40  ;;  %v596_v15 = vadd.f32 %v1726_v49, %v539_v9 }
 0x1c5   :  { %v692_v51 = vsel %vm691_vm5, %v690_v42, %v685_v59  ;;  %v732_v34 = vrot.slane %v592_v43, %v1772_v37  ;;  %v739_v35 = vrot.slane %v593_v36, %v1758_v3 }
 0x1c6   :  { %v699_v62 = vsel %vm698_vm6, %v697_v1, %v692_v51 }
 0x1c7   :  { %v543_v56 = vpop.xlane.xlu1 %542  ;;  %v706_v14 = vsel %vm705_vm7, %v704_v13, %v699_v62  ;;  %v597_v13 = vadd.f32 %v1726_v49, %v1728_v33 }
 0x1c8   :  { %v713_v38 = vsel %vm712_vm8, %v711_v10, %v706_v14  ;;  %v598_v51 = vadd.f32 %v1726_v49, %v543_v56  ;;  %v759_v10 = vrot.slane %v596_v15, %v1706_v0 }
 0x1c9   :  { %v720_v16 = vsel %vm719_vm9, %v718_v60, %v713_v38  ;;  %v763_v14 = vrot.slane %v597_v13, %v1701_v52  ;;  %v599_v60 = vadd.f32 %v1726_v49, %v545_v17 }
 0x1ca   :  { %v727_v7 = vsel %vm726_vm10, %v725_v61, %v720_v16  ;;  %v768_v62 = vrot.slane %v598_v51, %v1712_v8 }
 0x1cb   :  { %v549_v41 = vpop.xlane.xlu1 %548  ;;  %v734_v4 = vsel %vm733_vm11, %v732_v34, %v727_v7  ;;  %v764_v38 = vsel %vm656_vm0, %v763_v14, %v759_v10  ;;  %v773_v16 = vrot.slane %v599_v60, %v1709_v58  ;;  %v742_v60 = vadd.s32 4294967184, %v1688_v12 }
 0x1cc   :  { %v1800_v42 = vsel %vm740_vm12, %v739_v35, %v734_v4  ;;  %v769_v9 = vsel %vm663_vm1, %v768_v62, %v764_v38  ;;  %v601_v0 = vadd.f32 %v1726_v49, %v549_v41  ;;  %vm614_vm0 = vcmp.lt.s32.totalorder %v1688_v12, 8 }
 0x1cd   :  { %v774_v34 = vsel %vm670_vm2, %v773_v16, %v769_v9  ;;  %vm839_vm1 = vcmask 1041408   ;;  %vm1400_vm2 = vmmov 0  }
 0x1ce   :  { %v783_v7 = vrot.slane %v601_v0, %v1716_v11  ;;  %v594_v0 = vadd.f32 %v1726_v49, %v1698_v5 }
 0x1cf   :  { %v547_v39 = vpop.xlane.xlu1 %546 }
 0x1d0   :  { %v600_v36 = vadd.f32 %v1726_v49, %v547_v39 }
 0x1d2   :  { %v778_v56 = vrot.slane %v600_v36, %v1721_v53 }
 0x1d3   :  { %v553_v1 = vpop.xlane.xlu1 %552 }
 0x1d4   :  { %v779_v52 = vsel %vm677_vm3, %v778_v56, %v774_v34  ;;  %v603_v4 = vadd.f32 %v1726_v49, %v553_v1 }
 0x1d5   :  { %v784_v39 = vsel %vm684_vm4, %v783_v7, %v779_v52 }
 0x1d6   :  { %v793_v15 = vrot.slane %v603_v4, %v1724_v50  ;;  %v749_v50 = vadd.s32 4294967176, %v1688_v12  ;;  %v1971_v12 = vld [vmem:[#allocation17_spill] sm:$0xff] }
 0x1d7   :  { %v551_v59 = vpop.xlane.xlu1 %550 }
 0x1d8   :  { %v602_v33 = vadd.f32 %v1726_v49, %v551_v59 }
 0x1da   :  { %v788_v17 = vrot.slane %v602_v33, %v1731_v57  ;;  %v752_v33 = vsub.s32 %v749_v50, %v1546_v54 }
 0x1db   :  { %v557_v43 = vpop.xlane.xlu1 %556 }
 0x1dc   :  { %v789_v58 = vsel %vm691_vm5, %v788_v17, %v784_v39  ;;  %v605_v51 = vadd.f32 %v1726_v49, %v557_v43 }
 0x1dd   :  { %v794_v13 = vsel %vm698_vm6, %v793_v15, %v789_v58  ;;  %v1399_v15 = vmov 0.0  }
 0x1de   :  { %v803_v10 = vrot.slane %v605_v51, %v1739_v63  ;;  %1219 = vmatprep.subr.mxu1 %v1399_v15  ;;  %1251 = vmatprep.mubr.msk.f32.mxu1 %vm1400_vm2, %v1399_v15 }
 0x1df   :  { %v555_v61 = vpop.xlane.xlu1 %554  ;;  %1220 = vmatpush3.msra.mxu1 %v1494_v32  ;;  %v1966_v32 = vld [vmem:[#allocation22_spill] sm:$0xff] }
 0x1e0   :  { %v604_v35 = vadd.f32 %v1726_v49, %v555_v61  ;;  %1221 = vmatprep.subr.mxu1 %v1399_v15 }
 0x1e1   :  { %1222 = vmatpush3.msra.mxu1 %v1490_v31  ;;  %v1965_v31 = vld [vmem:[#allocation23_spill] sm:$0xff] }
 0x1e2   :  { %v798_v41 = vrot.slane %v604_v35, %v1744_v6  ;;  %1223 = vmatprep.subr.mxu1 %v1399_v15 }
 0x1e3   :  { %v561_v8 = vpop.xlane.xlu1 %560  ;;  %1224 = vmatpush3.msra.mxu1 %v1488_v30  ;;  %v1964_v30 = vld [vmem:[#allocation24_spill] sm:$0xff] }
 0x1e4   :  { %v799_v11 = vsel %vm705_vm7, %v798_v41, %v794_v13  ;;  %v607_v62 = vadd.f32 %v1726_v49, %v561_v8  ;;  %v745_v8 = vsub.s32 %v742_v60, %v1546_v54  ;;  %1225 = vmatprep.subr.mxu1 %v1399_v15 }
 0x1e5   :  { %v804_v6 = vsel %vm712_vm8, %v803_v10, %v799_v11  ;;  %1226 = vmatpush3.msra.mxu1 %v1484_v29  ;;  %v1963_v29 = vld [vmem:[#allocation25_spill] sm:$0xff] }
 0x1e6   :  { %v813_v61 = vrot.slane %v607_v62, %v1747_v40  ;;  %v746_v4 = vrot.slane %v594_v0, %v745_v8  ;;  %1227 = vmatprep.subr.mxu1 %v1399_v15 }
 0x1e7   :  { %v559_v53 = vpop.xlane.xlu1 %558  ;;  %1228 = vmatpush3.msra.mxu1 %v1482_v28 }
 0x1e8   :  { %v606_v59 = vadd.f32 %v1726_v49, %v559_v53  ;;  %v567_v38 = vpop.xlane.xlu0 %566  ;;  %v748_v54 = vsel %vm747_vm13, %v746_v4, %v1800_v42  ;;  %1229 = vmatprep.subr.mxu1 %v1399_v15  ;;  %v1972_v42 = vld [vmem:[#allocation16_spill] sm:$0xff] }
 0x1e9   :  { %v610_v34 = vadd.f32 %v1726_v49, %v567_v38  ;;  %1230 = vmatpush3.msra.mxu1 %v1478_v27 }
 0x1ea   :  { %v808_v1 = vrot.slane %v606_v59, %v1755_v2  ;;  %1231 = vmatprep.subr.mxu1 %v1399_v15 }
 0x1eb   :  { %v565_v57 = vpop.xlane.xlu1 %564  ;;  %v828_v53 = vrot.slane %v610_v34, %v745_v8  ;;  %1232 = vmatpush3.msra.mxu1 %v1476_v26 }
 0x1ec   :  { %v809_v43 = vsel %vm719_vm9, %v808_v1, %v804_v6  ;;  %v609_v2 = vadd.f32 %v1726_v49, %v565_v57  ;;  %1233 = vmatprep.subr.mxu1 %v1399_v15  ;;  %v1973_v57 = vld [vmem:[#allocation15_spill] sm:$0xff] }
 0x1ed   :  { %v814_v56 = vsel %vm726_vm10, %v813_v61, %v809_v43  ;;  %1234 = vmatpush3.msra.mxu1 %v1472_v25 }
 0x1ee   :  { %v823_v52 = vrot.slane %v609_v2, %v1758_v3  ;;  %1235 = vmatprep.subr.mxu1 %v1399_v15 }
 0x1ef   :  { %v563_v36 = vpop.xlane.xlu1 %562  ;;  %1236 = vmatpush3.msra.mxu1 %v1470_v24 }
 0x1f0   :  { %v608_v14 = vadd.f32 %v1726_v49, %v563_v36  ;;  %1237 = vmatprep.subr.mxu1 %v1399_v15 }
 0x1f1   :  { %1238 = vmatpush3.msra.mxu1 %v1466_v23  ;;  %v1304_v23 = vld [vmem:[#allocation3] sm:$0xff] }
 0x1f2   :  { %v818_v63 = vrot.slane %v608_v14, %v1772_v37  ;;  %1239 = vmatprep.subr.mxu1 %v1399_v15 }
 0x1f3   :  { %v537_v9 = vpop.xlane.xlu1 %536  ;;  %1240 = vmatpush3.msra.mxu1 %v1464_v22 }
 0x1f4   :  { %v595_v16 = vadd.f32 %v1726_v49, %v537_v9  ;;  %v819_v40 = vsel %vm733_vm11, %v818_v63, %v814_v56  ;;  %1241 = vmatprep.subr.mxu1 %v1399_v15 }
 0x1f5   :  { %v824_v7 = vsel %vm740_vm12, %v823_v52, %v819_v40  ;;  %1242 = vmatpush3.msra.mxu1 %v1460_v21 }
 0x1f6   :  { %v753_v37 = vrot.slane %v595_v16, %v752_v33  ;;  %v829_v5 = vsel %vm747_vm13, %v828_v53, %v824_v7  ;;  %1243 = vmatprep.subr.mxu1 %v1399_v15 }
 0x1f7   :  { %v569_v17 = vpop.xlane.xlu1 %568  ;;  %1244 = vmatpush3.msra.mxu1 %v1458_v20 }
 0x1f8   :  { %v611_v35 = vadd.f32 %v1726_v49, %v569_v17  ;;  %v755_v58 = vsel %vm754_vm14, %v753_v37, %v748_v54  ;;  %1245 = vmatprep.subr.mxu1 %v1399_v15 }
 0x1f9   :  { %1246 = vmatpush3.msra.mxu1 %v1454_v19 }
 0x1fa   :  { %v833_v39 = vrot.slane %v611_v35, %v752_v33  ;;  %1247 = vmatprep.subr.mxu1 %v1399_v15 }
 0x1fb   :  { %1248 = vmatpush3.msra.mxu1 %v1452_v18 }
 0x1fc   :  { %v834_v41 = vsel %vm754_vm14, %v833_v39, %v829_v5  ;;  %1249 = vmatprep.subr.mxu1 %v1399_v15 }
 0x1fd   :  { %v836_v3 = vsel %vm835_vm15, %v834_v41, %v755_v58  ;;  %1250 = vmatpush3.msra.mxu1 %v1304_v23 }
 0x1fe   :  { %v838_v59 = vsel %vm614_vm0, %v836_v3, -1e+30  ;;  %1254 = vmatprep.subr.mxu1 %v1399_v15 }
 0x1ff   :  { %v840_v49 = vsel %vm839_vm1, %v838_v59, -inf }
 0x200   :  { %841 = vmax.xlane.f32.xlu1 %v840_v49 }
 0x289   :  { %v842_v22 = vpop.xlane.xlu1 %841 }
 0x28a   :  { %v843_v21 = vsub.f32 %v838_v59, %v842_v22 }
 0x28c   :  { %v844_v24 = vmul.f32 1.442695, %v843_v21 }
 0x28e   :  { %1300 = vpow2.f32 %v844_v24 }
 0x29b   :  { %v1301_v25 = vpop.eup %1300 }
 0x29c   :  { %v846_v20 = vsel %vm839_vm1, %v1301_v25, 0.0 }
 0x29d   :  { %847 = vadd.xlane.f32.xlu1 %v846_v20 }
 0x326   :  { %v848_v19 = vpop.xlane.xlu1 %847 }
 0x327   :  { %1302 = vrcp.f32 %v848_v19 }
 0x334   :  { %v1303_v18 = vpop.eup %1302 }
 0x335   :  { %v850_v26 = vmul.f32 %v1303_v18, %v1301_v25 }
 0x337   :  { %v858_v27 = vrot.slane %v850_v26, %v1549_v55  ;;  %1022 = vst [vmem:[#allocation9] sm:$0x3] %v850_v26 }
 0x339   :  { %v866_v28 = vrot.slane %v858_v27, %v1549_v55 }
 0x33b   :  { %1252 = vmatmul.mubr.f32.vlgmr.msra.gmra.mxu1 %v866_v28 }
 0x33c   :  { %1255 = vmatpush3.msra.mxu1 %v1542_v48  ;;  %1286 = vmatprep.mubr.msk.f32.mxu1 %vm1400_vm2, %v1399_v15  ;;  %v859_v48 = vcombine.high %v858_v27, %v858_v27 }
 0x33d   :  { %1256 = vmatprep.subr.mxu1 %v1399_v15 }
 0x33e   :  { %1257 = vmatpush3.msra.mxu1 %v1538_v47  ;;  %v1970_v47 = vld [vmem:[#allocation18_spill] sm:$0xff]  ;;  %v873_v51 = vrot.slane %v859_v48, %v1549_v55 }
 0x33f   :  { %1258 = vmatprep.subr.mxu1 %v1399_v15 }
 0x340   :  { %1259 = vmatpush3.msra.mxu1 %v1536_v46  ;;  %v1969_v46 = vld [vmem:[#allocation19_spill] sm:$0xff] }
 0x341   :  { %1260 = vmatprep.subr.mxu1 %v1399_v15 }
 0x342   :  { %1261 = vmatpush3.msra.mxu1 %v1532_v45  ;;  %v1967_v45 = vld [vmem:[#allocation21_spill] sm:$0xff] }
 0x343   :  { %1262 = vmatprep.subr.mxu1 %v1399_v15 }
 0x344   :  { %1263 = vmatpush3.msra.mxu1 %v1530_v44  ;;  %v1968_v44 = vld [vmem:[#allocation20_spill] sm:$0xff] }
 0x345   :  { %1264 = vmatprep.subr.mxu1 %v1399_v15 }
 0x346   :  { %1265 = vmatpush3.msra.mxu1 %v1963_v29 }
 0x347   :  { %1266 = vmatprep.subr.mxu1 %v1399_v15 }
 0x348   :  { %1267 = vmatpush3.msra.mxu1 %v1964_v30 }
 0x349   :  { %1268 = vmatprep.subr.mxu1 %v1399_v15 }
 0x34a   :  { %1269 = vmatpush3.msra.mxu1 %v1965_v31 }
 0x34b   :  { %1270 = vmatprep.subr.mxu1 %v1399_v15 }
 0x34c   :  { %1271 = vmatpush3.msra.mxu1 %v1966_v32 }
 0x34d   :  { %1272 = vmatprep.subr.mxu1 %v1399_v15 }
 0x34e   :  { %1273 = vmatpush3.msra.mxu1 %v1967_v45 }
 0x34f   :  { %1274 = vmatprep.subr.mxu1 %v1399_v15 }
 0x350   :  { %1275 = vmatpush3.msra.mxu1 %v1968_v44 }
 0x351   :  { %1276 = vmatprep.subr.mxu1 %v1399_v15 }
 0x352   :  { %1277 = vmatpush3.msra.mxu1 %v1969_v46 }
 0x353   :  { %1278 = vmatprep.subr.mxu1 %v1399_v15 }
 0x354   :  { %1279 = vmatpush3.msra.mxu1 %v1970_v47 }
 0x355   :  { %1280 = vmatprep.subr.mxu1 %v1399_v15 }
 0x356   :  { %1281 = vmatpush3.msra.mxu1 %v1971_v12 }
 0x357   :  { %1282 = vmatprep.subr.mxu1 %v1399_v15 }
 0x358   :  { %1283 = vmatpush3.msra.mxu1 %v1972_v42 }
 0x359   :  { %1284 = vmatprep.subr.mxu1 %v1399_v15 }
 0x35a   :  { %1285 = vmatpush3.msra.mxu1 %v1973_v57 }
 0x35b   :  { %1287 = vmatmul.mubr.f32.vlgmr.msra.gmra.mxu1 %v873_v51 }
 0x35c   :  { %1356 = shalt.err (!%p1353_p0)
}
 0x35d   :  { %1042 = dma.vmem_to_hbm [thread:$0]  %s1040_s4, 32, %s1940_s7, [#allocation10]  }
 0x35e   :  { %s1402_s20 = smov [#allocation8]  }
 0x35f   :  { %s1029_s21 = sshll.u32 %s1402_s20, 4  ;;  %s1030_s21 = int_to_ptr.vmem [resolvable:$true] %s1029_s21 }
 0x360   :  { %s1365_s22 = scalar_lea.vmem %s1030_s21, 32  ;;  %p1370_p2 = scmp.lt.s32.totalorder %s1030_s21, %s1030_s21 }
 0x361   :  { %p1366_p1 = scmp.ne.s32.totalorder %s1030_s21, %s1365_s22  ;;  %p1371_p3 = scmp.lt.s32.totalorder %s1365_s22, %s1365_s22 }
 0x363   :  { %p1372_p4 = por %p1371_p3, %p1370_p2 }
 0x365   :  { %p1373_p5 = pnand %p1372_p4, %p1366_p1 }
 0x3fb   :  { %v942_v13 = vpop.f32.mrf.mxu1 }
 0x3fd   :  { %v1253_v11 = vpop.f32.mrf.mxu1 }
 0x41b   :  { %v1012_v55 = vpop.f32.mrf.mxu1 }
 0x41c   :  { %v1018_v1 = vrot.slane %v1012_v55, 7 }
 0x41d   :  { %v1288_v10 = vpop.f32.mrf.mxu1 }
 0x41e   :  { %v1019_v62 = vsel %vm835_vm15, %v1018_v1, %v942_v13 }
 0x41f   :  { %1021 = vst [vmem:[#allocation8] sm:$0x3] %v1019_v62 }
 0x420   :  { %1376 = shalt.err (!%p1373_p5)
}
 0x421   :  { %1032 = dma.vmem_to_hbm [thread:$0]  %s1030_s21, 32, %s1939_s6, [#allocation5]  }
 0x422   :  { %1389 = dma.done.wait [#allocation5], 32  }
 0x423   :  { %1390 = vsyncadd [#allocation5], 4294967264 }
 0x424   :  { %1391 = dma.done.wait [#allocation10], 32  }
 0x425   :  { %1392 = vsyncadd [#allocation10], 4294967264 }
 0x426   :  { %1049 = vsyncpa [#allocation4], 1 }
 0x427   :  { %1050 = vsyncpa [#allocation7], 1 }
 0x428   :  { %1051 = vsyncpa [#allocation5], 1 }
 0x429   :  { %1052 = vsyncpa [#allocation10], 1 }

</bundles_post_ra>
